<compile_context>
chip_gen: v7x
topology: tpu7x:2x2x1
jax: 0.10.0
libtpu: 0.0.40
codegen_flags: <defaults>
</compile_context>

<pallas_src>
import functools

import jax
import jax.numpy as jnp
from jax import lax
from jax.experimental import pallas as pl
from jax.experimental.pallas import tpu as pltpu


def _coo_densify_kernel(rows_ref, cols_ref, vals_ref, out_ref, acc_ref,
                        *, tm, tn, tk):
    """Accumulate dense[m, n] += sum_k vals[k]*[rows[k]==m]*[cols[k]==n] per K tile.

    rows_ref : VMEM int32 (1, TK)   COO row indices (padded entries have vals == 0)
    cols_ref : VMEM int32 (1, TK)   COO col indices (lane-dense, same layout as rows)
    vals_ref : VMEM f32   (1, TK)   COO values
    out_ref  : VMEM f32   (TM, TN)  dense output tile
    acc_ref  : VMEM f32   (TM, TN)  accumulator scratch (resident across K steps)
    """
    i = pl.program_id(0)          # output row-block
    j = pl.program_id(1)          # output col-block
    k = pl.program_id(2)          # nnz (contraction) block

    @pl.when(k == 0)
    def _():
        acc_ref[...] = jnp.zeros_like(acc_ref)

    # A^T : (TM, TK) -- scaled one-hot of the row indices (values folded in).
    row_iota = lax.broadcasted_iota(jnp.int32, (tm, tk), 0) + i * tm
    a_t = jnp.where(row_iota == rows_ref[...], vals_ref[...],
                    jnp.float32(0.0)).astype(jnp.float32)

    # B^T : (TN, TK) -- one-hot of the column indices, lane axis = nnz axis, so the
    # (1, TK) cols array broadcasts directly with NO cross-lane transpose.
    col_iota = lax.broadcasted_iota(jnp.int32, (tn, tk), 0) + j * tn
    b_t = jnp.where(col_iota == cols_ref[...], jnp.float32(1.0),
                    jnp.float32(0.0)).astype(jnp.float32)

    # Scatter-add over the nnz axis == matmul contraction over the shared last dim
    # of A^T and B^T (an "NT" matmul); lands on the MXU. Duplicates accumulate.
    acc_ref[...] += lax.dot_general(
        a_t, b_t,
        dimension_numbers=(((1,), (1,)), ((), ())),
        preferred_element_type=jnp.float32,
        precision=lax.Precision.HIGHEST)

    @pl.when(k == pl.num_programs(2) - 1)
    def _():
        out_ref[...] = acc_ref[...]


def _round_up(x, mult):
    return ((x + mult - 1) // mult) * mult


def coo_to_dense(rows, cols, vals, dense_shape):
    """Materialize a 2-D COO sparse tensor as a dense f32 array via Pallas."""
    m, n = dense_shape
    nnz = int(rows.shape[0])

    # The module's actual state is an empty sparse tensor -> dense is all zeros.
    # (Also avoids a zero-extent kernel / uninitialized output.)
    if nnz == 0 or m == 0 or n == 0:
        return jnp.zeros(dense_shape, jnp.float32)

    # Gen-safe tile sizes (f32): per-step VMEM working set stays in the low MiB,
    # fine for v7x's 64 MiB physical / 32 MiB default scoped limit and trivially
    # for v5e/v6e.  Tiles are lane-dense (TN multiple of 128, TM multiple of 8).
    tm = min(256, _round_up(m, 8))
    tn = min(512, _round_up(n, 128))
    tk = min(512, _round_up(nnz, 128))

    m_pad = _round_up(m, tm)
    n_pad = _round_up(n, tn)
    k_pad = _round_up(nnz, tk)

    # Padded entries have vals == 0 -> contribute nothing.  All index/value arrays
    # are lane-dense (1, K): one unmasked DMA each, no 128x lane padding waste.
    rows_p = jnp.pad(rows.astype(jnp.int32), (0, k_pad - nnz)).reshape(1, k_pad)
    cols_p = jnp.pad(cols.astype(jnp.int32), (0, k_pad - nnz)).reshape(1, k_pad)
    vals_p = jnp.pad(vals.astype(jnp.float32), (0, k_pad - nnz)).reshape(1, k_pad)

    grid = (m_pad // tm, n_pad // tn, k_pad // tk)

    kernel = functools.partial(_coo_densify_kernel, tm=tm, tn=tn, tk=tk)

    cost = pl.CostEstimate(
        flops=2 * m_pad * n_pad * k_pad,
        transcendentals=0,
        bytes_accessed=(3 * k_pad * 4 * grid[0] * grid[1]) + m_pad * n_pad * 4,
    )

    dense_padded = pl.pallas_call(
        kernel,
        out_shape=jax.ShapeDtypeStruct((m_pad, n_pad), jnp.float32),
        grid_spec=pltpu.PrefetchScalarGridSpec(
            num_scalar_prefetch=0,
            grid=grid,
            in_specs=[
                pl.BlockSpec((1, tk), lambda i, j, k: (0, k)),   # rows
                pl.BlockSpec((1, tk), lambda i, j, k: (0, k)),   # cols
                pl.BlockSpec((1, tk), lambda i, j, k: (0, k)),   # vals
            ],
            out_specs=pl.BlockSpec((tm, tn), lambda i, j, k: (i, j)),
            scratch_shapes=[pltpu.VMEM((tm, tn), jnp.float32)],
        ),
        compiler_params=pltpu.CompilerParams(
            dimension_semantics=("parallel", "parallel", "arbitrary"),
            vmem_limit_bytes=64 << 20,
        ),
        cost_estimate=cost,
    )(rows_p, cols_p, vals_p)

    # Skip the extra HBM round-trip when the dense shape is already tile-aligned.
    if m_pad == m and n_pad == n:
        return dense_padded
    return dense_padded[:m, :n]


class SparseTensorModule:
    """JAX/Pallas port of the PyTorch SparseTensorModule."""

    def __init__(self, dense_shape=(8, 128), nnz=8, key=None):
        # The original module stores torch.sparse.FloatTensor() -- an empty
        # (nnz=0) sparse COO tensor.  For a runnable kernel demo we also build a
        # small deterministic non-empty COO state.
        if key is None:
            key = jax.random.PRNGKey(0)
        kr, kc, kv = jax.random.split(key, 3)
        m, n = dense_shape
        self.dense_shape = dense_shape
        self.rows = jax.random.randint(kr, (nnz,), 0, m, dtype=jnp.int32)
        self.cols = jax.random.randint(kc, (nnz,), 0, n, dtype=jnp.int32)
        self.vals = jax.random.normal(kv, (nnz,), dtype=jnp.float32)

    def forward(self):
        # Matches the PyTorch module exactly: forward() is `pass` -> None.
        # TODO(synk): PyTorch forward performs no computation; nothing to lower.
        return None

    def densify(self):
        # The Pallas hot path for the module's sparse state.
        return coo_to_dense(self.rows, self.cols, self.vals, self.dense_shape)


if __name__ == "__main__":
    mod = SparseTensorModule(dense_shape=(8, 128), nnz=8,
                             key=jax.random.PRNGKey(0))

    # Exact forward semantics: returns None.
    assert mod.forward() is None

    # Run the Pallas sparse->dense kernel on the module's COO state.
    dense = jax.block_until_ready(mod.densify())

    # Pure-JAX reference (scatter-add, duplicates accumulate).
    ref = jnp.zeros(mod.dense_shape, jnp.float32).at[mod.rows, mod.cols].add(mod.vals)
    assert dense.shape == mod.dense_shape
    assert jnp.allclose(dense, ref, atol=1e-5), "mismatch vs reference"

    # Also exercise a non-aligned / larger shape with duplicate indices to check
    # the K-grid accumulator and the padding/slice path.
    nnz2 = 300
    m2, n2 = 20, 200
    kr, kc, kv = jax.random.split(jax.random.PRNGKey(1), 3)
    rows2 = jax.random.randint(kr, (nnz2,), 0, m2, dtype=jnp.int32)
    cols2 = jax.random.randint(kc, (nnz2,), 0, n2, dtype=jnp.int32)
    vals2 = jax.random.normal(kv, (nnz2,), dtype=jnp.float32)
    dense2 = jax.block_until_ready(coo_to_dense(rows2, cols2, vals2, (m2, n2)))
    ref2 = jnp.zeros((m2, n2), jnp.float32).at[rows2, cols2].add(vals2)
    assert jnp.allclose(dense2, ref2, atol=1e-4), "mismatch vs reference (case 2)"

    # The module's actual empty-sparse state: must return explicit zeros.
    empty = coo_to_dense(jnp.zeros((0,), jnp.int32),
                         jnp.zeros((0,), jnp.int32),
                         jnp.zeros((0,), jnp.float32),
                         mod.dense_shape)
    empty = jax.block_until_ready(empty)
    assert empty.shape == mod.dense_shape and jnp.all(empty == 0.0)

    print("KERNEL_OK")
</pallas_src>

<mosaic_0001>
module attributes {stable_mosaic.version = 11 : i64} {
  func.func @_coo_densify_kernel(%arg0: i32, %arg1: i32, %arg2: i32, %arg3: memref<1x128xi32, #tpu.memory_space<vmem>>, %arg4: memref<1x128xi32, #tpu.memory_space<vmem>>, %arg5: memref<1x128xf32, #tpu.memory_space<vmem>>, %arg6: memref<8x128xf32, #tpu.memory_space<vmem>>, %arg7: memref<8x128xf32, #tpu.memory_space<vmem>>) attributes {dimension_semantics = [#tpu.dimension_semantics<parallel>, #tpu.dimension_semantics<parallel>, #tpu.dimension_semantics<arbitrary>], iteration_bounds = array<i64: 1, 1, 1>, scalar_prefetch = 0 : i64, scratch_operands = 1 : i64, tpu.core_type = #tpu.core_type<tc>, window_params = [{transform_indices = @transform_0, window_bounds = array<i64: 1, 128>}, {transform_indices = @transform_1, window_bounds = array<i64: 1, 128>}, {transform_indices = @transform_2, window_bounds = array<i64: 1, 128>}, {transform_indices = @transform_3, window_bounds = array<i64: 8, 128>}]} {
    %c0_i32 = arith.constant 0 : i32
    %0 = arith.cmpi eq, %arg2, %c0_i32 : i32
    %1 = arith.extui %0 : i1 to i32
    %c0_i32_0 = arith.constant 0 : i32
    %2 = arith.cmpi ne, %1, %c0_i32_0 : i32
    scf.if %2 {
      %cst_15 = arith.constant 0.000000e+00 : f32
      %32 = vector.broadcast %cst_15 : f32 to vector<8x128xf32>
      %c0_16 = arith.constant 0 : index
      %c0_17 = arith.constant 0 : index
      %33 = vector.load %arg7[%c0_16, %c0_17] : memref<8x128xf32, #tpu.memory_space<vmem>>, vector<8x128xf32>
      tpu.vector_store %arg7[%c0_16, %c0_17], %32 {strides = array<i32>} : memref<8x128xf32, #tpu.memory_space<vmem>>, vector<8x128xf32>,
    } else {
    }
    %3 = tpu.iota {dimensions = array<i32: 0>} : vector<8x128xi32>
    %c8_i32 = arith.constant 8 : i32
    %4 = arith.muli %arg0, %c8_i32 : i32
    %5 = vector.broadcast %4 : i32 to vector<8x128xi32>
    %6 = arith.addi %3, %5 : vector<8x128xi32>
    %c0 = arith.constant 0 : index
    %c0_1 = arith.constant 0 : index
    %7 = vector.load %arg3[%c0, %c0_1] : memref<1x128xi32, #tpu.memory_space<vmem>>, vector<1x128xi32>
    %8 = vector.broadcast %7 : vector<1x128xi32> to vector<8x128xi32>
    %9 = arith.cmpi eq, %6, %8 : vector<8x128xi32>
    %c0_2 = arith.constant 0 : index
    %c0_3 = arith.constant 0 : index
    %10 = vector.load %arg5[%c0_2, %c0_3] : memref<1x128xf32, #tpu.memory_space<vmem>>, vector<1x128xf32>
    %cst = arith.constant 0.000000e+00 : f32
    %11 = vector.shape_cast %10 : vector<1x128xf32> to vector<1x128xf32>
    %12 = vector.broadcast %11 : vector<1x128xf32> to vector<8x128xf32>
    %13 = vector.broadcast %cst : f32 to vector<8x128xf32>
    %14 = arith.select %9, %12, %13 : vector<8x128xi1>, vector<8x128xf32>
    %15 = tpu.iota {dimensions = array<i32: 0>} : vector<128x128xi32>
    %c128_i32 = arith.constant 128 : i32
    %16 = arith.muli %arg1, %c128_i32 : i32
    %17 = vector.broadcast %16 : i32 to vector<128x128xi32>
    %18 = arith.addi %15, %17 : vector<128x128xi32>
    %c0_4 = arith.constant 0 : index
    %c0_5 = arith.constant 0 : index
    %19 = vector.load %arg4[%c0_4, %c0_5] : memref<1x128xi32, #tpu.memory_space<vmem>>, vector<1x128xi32>
    %20 = vector.broadcast %19 : vector<1x128xi32> to vector<128x128xi32>
    %21 = arith.cmpi eq, %18, %20 : vector<128x128xi32>
    %cst_6 = arith.constant 1.000000e+00 : f32
    %cst_7 = arith.constant 0.000000e+00 : f32
    %22 = vector.broadcast %cst_6 : f32 to vector<128x128xf32>
    %23 = vector.broadcast %cst_7 : f32 to vector<128x128xf32>
    %24 = arith.select %21, %22, %23 : vector<128x128xi1>, vector<128x128xf32>
    %c0_8 = arith.constant 0 : index
    %c0_9 = arith.constant 0 : index
    %25 = vector.load %arg7[%c0_8, %c0_9] : memref<8x128xf32, #tpu.memory_space<vmem>>, vector<8x128xf32>
    %cst_10 = arith.constant dense<0.000000e+00> : vector<8x128xf32>
    %26 = tpu.matmul %14, %24, %cst_10 {dimension_numbers = #tpu.dot_dimension_numbers<[1], [1], [0], [0], [0, 0, 1, 0], [], []>, precision = #tpu.contract_precision<fp32>} : vector<8x128xf32>, vector<128x128xf32>, vector<8x128xf32> -> vector<8x128xf32>
    %27 = arith.addf %25, %26 : vector<8x128xf32>
    %c0_11 = arith.constant 0 : index
    %c0_12 = arith.constant 0 : index
    %28 = vector.load %arg7[%c0_11, %c0_12] : memref<8x128xf32, #tpu.memory_space<vmem>>, vector<8x128xf32>
    tpu.vector_store %arg7[%c0_11, %c0_12], %27 {strides = array<i32>} : memref<8x128xf32, #tpu.memory_space<vmem>>, vector<8x128xf32>,
    %c0_i32_13 = arith.constant 0 : i32
    %29 = arith.cmpi eq, %arg2, %c0_i32_13 : i32
    %30 = arith.extui %29 : i1 to i32
    %c0_i32_14 = arith.constant 0 : i32
    %31 = arith.cmpi ne, %30, %c0_i32_14 : i32
    scf.if %31 {
      %c0_15 = arith.constant 0 : index
      %c0_16 = arith.constant 0 : index
      %32 = vector.load %arg7[%c0_15, %c0_16] : memref<8x128xf32, #tpu.memory_space<vmem>>, vector<8x128xf32>
      %c0_17 = arith.constant 0 : index
      %c0_18 = arith.constant 0 : index
      %33 = vector.load %arg6[%c0_17, %c0_18] : memref<8x128xf32, #tpu.memory_space<vmem>>, vector<8x128xf32>
      tpu.vector_store %arg6[%c0_17, %c0_18], %32 {strides = array<i32>} : memref<8x128xf32, #tpu.memory_space<vmem>>, vector<8x128xf32>,
    } else {
    }
    return
  }
  func.func @transform_0(%arg0: i32, %arg1: i32, %arg2: i32) -> (i32, i32) {
    %c0_i32 = arith.constant 0 : i32
    %c0_i32_0 = arith.constant 0 : i32
    return %c0_i32, %arg2 : i32, i32
  }
  func.func @transform_1(%arg0: i32, %arg1: i32, %arg2: i32) -> (i32, i32) {
    %c0_i32 = arith.constant 0 : i32
    %c0_i32_0 = arith.constant 0 : i32
    return %c0_i32, %arg2 : i32, i32
  }
  func.func @transform_2(%arg0: i32, %arg1: i32, %arg2: i32) -> (i32, i32) {
    %c0_i32 = arith.constant 0 : i32
    %c0_i32_0 = arith.constant 0 : i32
    return %c0_i32, %arg2 : i32, i32
  }
  func.func @transform_3(%arg0: i32, %arg1: i32, %arg2: i32) -> (i32, i32) {
    %c0_i32 = arith.constant 0 : i32
    return %arg0, %arg1 : i32, i32
  }
}

</mosaic_0001>

<bundles_post_ra>
// kernel: tpu_custom_call.1
= control target key start
LH: loop header
LB: loop body
LE: loop exit
PB: predicated region body
PF: predicated region fallthrough
CT: control target
= control target key end

     0   :  { %8 = vsyncpa [#allocation4], 0  ;;  %s1797_s0 = inlined_call_operand.hbm [shape: s32[1,128], index: 0, kind: input, shape index: {}]   ;;  %s1798_s1 = inlined_call_operand.hbm [shape: s32[1,128], index: 1, kind: input, shape index: {}]   ;;  %s1799_s2 = inlined_call_operand.hbm [shape: f32[1,128], index: 2, kind: input, shape index: {}]   ;;  %s1800_s3 = inlined_call_operand.hbm [shape: f32[8,128], index: 3, kind: output, shape index: {}]  }
   0x1   :  { %9 = vsyncpa [#allocation7], 0 }
   0x2   :  { %10 = vsyncpa [#allocation5], 0  ;;  %s1331_s12 = smov [#allocation6]   ;;  %s1332_s14 = smov [#allocation3]  }
   0x3   :  { %s27_s13 = sshll.u32 %s1331_s12, 4  ;;  %s17_s15 = sshll.u32 %s1332_s14, 4  ;;  %s28_s13 = int_to_ptr.vmem [resolvable:$true] %s27_s13  ;;  %s18_s15 = int_to_ptr.vmem [resolvable:$true] %s17_s15 }
   0x4   :  { %s1237_s18 = scalar_lea.hbm %s1798_s1, 16 }
   0x5   :  { %p1238_p0 = scmp.ne.s32.totalorder %s1798_s1, %s1237_s18  ;;  %p1241_p1 = scmp.lt.u32.totalorder %s1237_s18, %s1798_s1 }
   0x7   :  { %p1243_p2 = pnand %p1241_p1, %p1238_p0 }
   0x9   :  { %1246 = shalt.err (!%p1243_p2)
}
   0xa   :  { %s1247_s23 = scalar_lea.vmem %s28_s13, 16  ;;  %s1251_s24 = scalar_lea.vmem %s28_s13, 32 }
   0xb   :  { %p1248_p3 = scmp.ne.s32.totalorder %s28_s13, %s1247_s23  ;;  %p1252_p4 = scmp.lt.s32.totalorder %s28_s13, %s28_s13 }
   0xc   :  { %p1253_p5 = scmp.lt.s32.totalorder %s1251_s24, %s1247_s23 }
   0xe   :  { %p1254_p6 = por %p1253_p5, %p1252_p4 }
  0x10   :  { %p1255_p7 = pnand %p1254_p6, %p1248_p3 }
  0x12   :  { %1258 = shalt.err (!%p1255_p7)
}
  0x13   :  { %30 = dma.hbm_to_vmem [thread:$0]  %s1798_s1, 16, %s28_s13, [#allocation7]  }
  0x14   :  { %s1259_s29 = scalar_lea.hbm %s1797_s0, 16 }
  0x15   :  { %p1260_p8 = scmp.ne.s32.totalorder %s1797_s0, %s1259_s29  ;;  %p1263_p9 = scmp.lt.u32.totalorder %s1259_s29, %s1797_s0 }
  0x17   :  { %p1265_p10 = pnand %p1263_p9, %p1260_p8 }
  0x19   :  { %1268 = shalt.err (!%p1265_p10)
}
  0x1a   :  { %s1269_s7 = scalar_lea.vmem %s18_s15, 16  ;;  %s1273_s8 = scalar_lea.vmem %s18_s15, 32 }
  0x1b   :  { %p1270_p11 = scmp.ne.s32.totalorder %s18_s15, %s1269_s7  ;;  %p1274_p12 = scmp.lt.s32.totalorder %s18_s15, %s18_s15 }
  0x1c   :  { %p1275_p13 = scmp.lt.s32.totalorder %s1273_s8, %s1269_s7 }
  0x1e   :  { %p1276_p0 = por %p1275_p13, %p1274_p12 }
  0x20   :  { %p1277_p1 = pnand %p1276_p0, %p1270_p11 }
  0x22   :  { %1280 = shalt.err (!%p1277_p1)
}
  0x23   :  { %20 = dma.hbm_to_vmem [thread:$0]  %s1797_s0, 16, %s18_s15, [#allocation4]  }
  0x24   :  { %s1333_s10 = smov [#allocation8]   ;;  %s1281_s14 = scalar_lea.hbm %s1799_s2, 16 }
  0x25   :  { %s37_s11 = sshll.u32 %s1333_s10, 4  ;;  %p1282_p2 = scmp.ne.s32.totalorder %s1799_s2, %s1281_s14  ;;  %s38_s11 = int_to_ptr.vmem [resolvable:$true] %s37_s11 }
  0x26   :  { %p1285_p3 = scmp.lt.u32.totalorder %s1281_s14, %s1799_s2 }
  0x28   :  { %p1287_p4 = pnand %p1285_p3, %p1282_p2 }
  0x2a   :  { %1290 = shalt.err (!%p1287_p4)
}
  0x2b   :  { %s1291_s20 = scalar_lea.vmem %s38_s11, 16  ;;  %s1295_s0 = scalar_lea.vmem %s38_s11, 32 }
  0x2c   :  { %p1292_p5 = scmp.ne.s32.totalorder %s38_s11, %s1291_s20  ;;  %p1296_p6 = scmp.lt.s32.totalorder %s38_s11, %s38_s11 }
  0x2d   :  { %p1297_p7 = scmp.lt.s32.totalorder %s1295_s0, %s1291_s20 }
  0x2f   :  { %p1298_p8 = por %p1297_p7, %p1296_p6 }
  0x31   :  { %p1299_p9 = pnand %p1298_p8, %p1292_p5 }
  0x33   :  { %1302 = shalt.err (!%p1299_p9)
}
  0x34   :  { %40 = dma.hbm_to_vmem [thread:$0]  %s1799_s2, 16, %s38_s11, [#allocation7]  }
  0x35   :  { %1325 = dma.done.wait [#allocation4], 16  }
  0x36   :  { %1326 = vsyncadd [#allocation4], 4294967280 }
  0x37   :  { %1327 = dma.done.wait [#allocation7], 32  }
  0x38   :  { %1328 = vsyncadd [#allocation7], 4294967264  ;;  %v55_v0 = vlaneseq  ;;  %v1334_v1 = vmov 0.0|0.0   ;;  %vm1335_vm0 = vmmov 0   ;;  %v1336_v3 = vmov 0.0   ;;  %s1338_s2 = smov [#allocation9]  }
  0x39   :  { %1076 = vmatprep.subr.bf16.mxu1 %v1334_v1  ;;  %1148 = vmatprep.subr.bf16.mxu0 %v1334_v1  ;;  %v1404_v5 = vld [vmem:[#allocation6] ss:$0 sm:$0xff]  ;;  %v1337_v9 = vmov 1.0|1.0   ;;  %v713_v54 = vld [vmem:[#allocation3] ss:$0 sm:$0xff] }
  0x3a   :  { %v1397_v2 = vshrl.u32 %v55_v0, 7  ;;  %898 = vmatprep.mubr.msk.f32.mxu1 %vm1335_vm0, %v1336_v3  ;;  %1003 = vmatprep.mubr.msk.f32.mxu0 %vm1335_vm0, %v1336_v3  ;;  %v714_v58 = vld [vmem:[#allocation8] ss:$0 sm:$0xff]  ;;  %s703_s22 = sshll.u32 %s1338_s2, 4  ;;  %s704_s22 = int_to_ptr.vmem [resolvable:$true] %s703_s22 }
  0x3b   :  { %s1303_s23 = scalar_lea.vmem %s704_s22, 128  ;;  %p1308_p11 = scmp.lt.s32.totalorder %s704_s22, %s704_s22 }
  0x3c   :  { %v74_v4 = vadd.s32 8, %v1397_v2  ;;  %vm112_vm1 = vcmp.eq.s32.totalorder %v1397_v2, %v1404_v5  ;;  %v75_v6 = vadd.s32 16, %v1397_v2  ;;  %v76_v7 = vadd.s32 24, %v1397_v2  ;;  %p1304_p10 = scmp.ne.s32.totalorder %s704_s22, %s1303_s23  ;;  %p1309_p12 = scmp.lt.s32.totalorder %s1303_s23, %s1303_s23 }
  0x3d   :  { %v77_v11 = vadd.s32 32, %v1397_v2  ;;  %v78_v12 = vadd.s32 40, %v1397_v2  ;;  %v79_v14 = vadd.s32 48, %v1397_v2  ;;  %v80_v15 = vadd.s32 56, %v1397_v2 }
  0x3e   :  { %vm113_vm2 = vcmp.eq.s32.totalorder %v74_v4, %v1404_v5  ;;  %vm114_vm4 = vcmp.eq.s32.totalorder %v75_v6, %v1404_v5  ;;  %vm115_vm5 = vcmp.eq.s32.totalorder %v76_v7, %v1404_v5  ;;  %v81_v16 = vadd.s32 64, %v1397_v2  ;;  %p1310_p13 = por %p1309_p12, %p1308_p11 }
  0x3f   :  { %vm1416_vm3 = vmpackc.low %vm113_vm2, %vm112_vm1  ;;  %vm116_vm7 = vcmp.eq.s32.totalorder %v77_v11, %v1404_v5  ;;  %vm117_vm8 = vcmp.eq.s32.totalorder %v78_v12, %v1404_v5  ;;  %vm118_vm10 = vcmp.eq.s32.totalorder %v79_v14, %v1404_v5  ;;  %vm119_vm11 = vcmp.eq.s32.totalorder %v80_v15, %v1404_v5 }
  0x40   :  { %1078 = vmatpush3.bf16.xpose.msk.msra.mxu1 %vm1416_vm3, %v1337_v9  ;;  %1150 = vmatpush3.bf16.xpose.msk.msra.mxu0 %vm1416_vm3, %v1337_v9  ;;  %vm1434_vm6 = vmpackc.low %vm115_vm5, %vm114_vm4  ;;  %v82_v17 = vadd.s32 72, %v1397_v2  ;;  %v83_v18 = vadd.s32 80, %v1397_v2  ;;  %v128_v19 = vsel %vm112_vm1, 1.0, %v1336_v3  ;;  %v129_v20 = vsel %vm113_vm2, 1.0, %v1336_v3  ;;  %p1311_p0 = pnand %p1310_p13, %p1304_p10 }
  0x41   :  { %1079 = vmatprep.subr.bf16.mxu1 %v1334_v1  ;;  %1151 = vmatprep.subr.bf16.mxu0 %v1334_v1  ;;  %vm1454_vm9 = vmpackc.low %vm117_vm8, %vm116_vm7  ;;  %v130_v21 = vsel %vm114_vm4, 1.0, %v1336_v3  ;;  %v84_v23 = vadd.s32 88, %v1397_v2  ;;  %v131_v24 = vsel %vm115_vm5, 1.0, %v1336_v3  ;;  %v132_v25 = vsel %vm116_vm7, 1.0, %v1336_v3 }
  0x42   :  { %vm1483_vm12 = vmpackc.low %vm119_vm11, %vm118_vm10  ;;  %v133_v26 = vsel %vm117_vm8, 1.0, %v1336_v3  ;;  %vm120_vm13 = vcmp.eq.s32.totalorder %v81_v16, %v1404_v5  ;;  %v134_v27 = vsel %vm118_vm10, 1.0, %v1336_v3  ;;  %v135_v28 = vsel %vm119_vm11, 1.0, %v1336_v3 }
  0x43   :  { %vm121_vm14 = vcmp.eq.s32.totalorder %v82_v17, %v1404_v5  ;;  %v136_v29 = vsel %vm120_vm13, 1.0, %v1336_v3  ;;  %v1504_v30 = vsub.f32 %v128_v19, %v128_v19  ;;  %v1506_v31 = vsub.f32 %v129_v20, %v129_v20 }
  0x44   :  { %v1508_v32 = vsub.f32 %v130_v21, %v130_v21  ;;  %v137_v33 = vsel %vm121_vm14, 1.0, %v1336_v3  ;;  %v1519_v34 = vsub.f32 %v131_v24, %v131_v24  ;;  %v1521_v35 = vsub.f32 %v132_v25, %v132_v25  ;;  %vm1555_vm2 = vmpackc.low %vm121_vm14, %vm120_vm13 }
  0x45   :  { %v1523_v36 = vsub.f32 %v133_v26, %v133_v26  ;;  %v1527_v37 = vsub.f32 %v134_v27, %v134_v27  ;;  %v1529_v38 = vsub.f32 %v135_v28, %v135_v28  ;;  %v1531_v39 = vsub.f32 %v136_v29, %v136_v29 }
  0x46   :  { %vm122_vm15 = vcmp.eq.s32.totalorder %v83_v18, %v1404_v5  ;;  %v1534_v40 = vsub.f32 %v137_v33, %v137_v33  ;;  %vm123_vm1 = vcmp.eq.s32.totalorder %v84_v23, %v1404_v5  ;;  %v1125_v41 = vpack.c.bf16 %v1506_v31, %v1504_v30 }
  0x47   :  { %v1128_v42 = vpack.c.bf16 %v1519_v34, %v1508_v32  ;;  %v138_v43 = vsel %vm122_vm15, 1.0, %v1336_v3  ;;  %v139_v44 = vsel %vm123_vm1, 1.0, %v1336_v3  ;;  %v1131_v45 = vpack.c.bf16 %v1523_v36, %v1521_v35  ;;  %vm1589_vm7 = vmpackc.low %vm123_vm1, %vm122_vm15 }
  0x48   :  { %1081 = vmatpush3.bf16.xpose.msk.msra.mxu1 %vm1434_vm6, %v1337_v9  ;;  %1153 = vmatpush3.bf16.xpose.msk.msra.mxu0 %vm1434_vm6, %v1337_v9  ;;  %v1134_v46 = vpack.c.bf16 %v1529_v38, %v1527_v37  ;;  %v1137_v48 = vpack.c.bf16 %v1534_v40, %v1531_v39  ;;  %v1561_v49 = vsub.f32 %v138_v43, %v138_v43  ;;  %v85_v51 = vadd.s32 96, %v1397_v2 }
  0x49   :  { %1082 = vmatprep.subr.bf16.mxu1 %v1334_v1  ;;  %1154 = vmatprep.subr.bf16.mxu0 %v1334_v1  ;;  %v1563_v50 = vsub.f32 %v139_v44, %v139_v44  ;;  %v86_v52 = vadd.s32 104, %v1397_v2  ;;  %vm65_vm8 = vcmp.eq.s32.totalorder %v1397_v2, %v713_v54  ;;  %v87_v61 = vadd.s32 112, %v1397_v2 }
  0x4a   :  { %vm124_vm4 = vcmp.eq.s32.totalorder %v85_v51, %v1404_v5  ;;  %v88_v62 = vadd.s32 120, %v1397_v2  ;;  %v73_v63 = vsel %vm65_vm8, %v714_v58, 0.0  ;;  %v222_v15 = vand.u32 4294901760, %v1504_v30 }
  0x4b   :  { %v1140_v53 = vpack.c.bf16 %v1563_v50, %v1561_v49  ;;  %vm125_vm5 = vcmp.eq.s32.totalorder %v86_v52, %v1404_v5  ;;  %v140_v55 = vsel %vm124_vm4, 1.0, %v1336_v3  ;;  %vm126_vm10 = vcmp.eq.s32.totalorder %v87_v61, %v1404_v5 }
  0x4c   :  { %v141_v56 = vsel %vm125_vm5, 1.0, %v1336_v3  ;;  %v1594_v59 = vsub.f32 %v140_v55, %v140_v55  ;;  %vm127_vm11 = vcmp.eq.s32.totalorder %v88_v62, %v1404_v5  ;;  %v1612_v2 = vand.u32 4294901760, %v73_v63  ;;  %vm1624_vm13 = vmpackc.low %vm125_vm5, %vm124_vm4 }
  0x4d   :  { %v1596_v60 = vsub.f32 %v141_v56, %v141_v56  ;;  %v142_v4 = vsel %vm126_vm10, 1.0, %v1336_v3  ;;  %v143_v6 = vsel %vm127_vm11, 1.0, %v1336_v3  ;;  %v228_v16 = vand.u32 4294901760, %v1506_v31  ;;  %vm1654_vm14 = vmpackc.low %vm127_vm11, %vm126_vm10 }
  0x4e   :  { %v1628_v11 = vsub.f32 %v142_v4, %v142_v4  ;;  %v1630_v12 = vsub.f32 %v143_v6, %v143_v6  ;;  %v1633_v14 = vsub.f32 %v73_v63, %v1612_v2  ;;  %v223_v19 = vsub.f32 %v1504_v30, %v222_v15 }
  0x4f   :  { %v1143_v0 = vpack.c.bf16 %v1596_v60, %v1594_v59  ;;  %v229_v20 = vsub.f32 %v1506_v31, %v228_v16  ;;  %v234_v26 = vand.u32 4294901760, %v1508_v32  ;;  %v240_v27 = vand.u32 4294901760, %v1519_v34 }
  0x50   :  { %1084 = vmatpush3.bf16.xpose.msk.msra.mxu1 %vm1454_vm9, %v1337_v9  ;;  %1156 = vmatpush3.bf16.xpose.msk.msra.mxu0 %vm1454_vm9, %v1337_v9  ;;  %v1146_v17 = vpack.c.bf16 %v1630_v12, %v1628_v11  ;;  %v212_v18 = vand.u32 4294901760, %v1633_v14  ;;  %v224_v24 = vand.u32 4294901760, %v223_v19  ;;  %v1173_v29 = vpack.c.bf16 %v228_v16, %v222_v15 }
  0x51   :  { %1085 = vmatprep.subr.bf16.mxu1 %v1334_v1  ;;  %1157 = vmatprep.subr.bf16.mxu0 %v1334_v1  ;;  %v230_v25 = vand.u32 4294901760, %v229_v20  ;;  %v235_v33 = vsub.f32 %v1508_v32, %v234_v26  ;;  %v241_v43 = vsub.f32 %v1519_v34, %v240_v27  ;;  %v246_v44 = vand.u32 4294901760, %v1521_v35 }
  0x52   :  { %v213_v23 = vsub.f32 %v1633_v14, %v212_v18  ;;  %v252_v51 = vand.u32 4294901760, %v1523_v36  ;;  %v1176_v56 = vpack.c.bf16 %v240_v27, %v234_v26  ;;  %v258_v62 = vand.u32 4294901760, %v1527_v37 }
  0x53   :  { %v1101_v28 = vpack.c.bf16 %v230_v25, %v224_v24  ;;  %v236_v52 = vand.u32 4294901760, %v235_v33  ;;  %v242_v54 = vand.u32 4294901760, %v241_v43  ;;  %v247_v58 = vsub.f32 %v1521_v35, %v246_v44 }
  0x54   :  { %v214_v5 = vand.u32 4294901760, %v213_v23  ;;  %v253_v61 = vsub.f32 %v1523_v36, %v252_v51  ;;  %v264_v63 = vand.u32 4294901760, %v1529_v38  ;;  %v1179_v16 = vpack.c.bf16 %v252_v51, %v246_v44 }
  0x55   :  { %v1104_v55 = vpack.c.bf16 %v242_v54, %v236_v52  ;;  %v248_v4 = vand.u32 4294901760, %v247_v58  ;;  %v270_v20 = vand.u32 4294901760, %v1531_v39  ;;  %v276_v23 = vand.u32 4294901760, %v1534_v40 }
  0x56   :  { %v254_v6 = vand.u32 4294901760, %v253_v61  ;;  %v265_v19 = vsub.f32 %v1529_v38, %v264_v63  ;;  %v1182_v27 = vpack.c.bf16 %v264_v63, %v258_v62  ;;  %v288_v33 = vand.u32 4294901760, %v1563_v50 }
  0x57   :  { %v1185_v52 = vpack.c.bf16 %v276_v23, %v270_v20  ;;  %v300_v58 = vand.u32 4294901760, %v1596_v60 }
  0x58   :  { %1087 = vmatpush3.bf16.xpose.msk.msra.mxu1 %vm1483_vm12, %v1337_v9  ;;  %1159 = vmatpush3.bf16.xpose.msk.msra.mxu0 %vm1483_vm12, %v1337_v9  ;;  %v1107_v15 = vpack.c.bf16 %v254_v6, %v248_v4  ;;  %v266_v25 = vand.u32 4294901760, %v265_v19 }
  0x59   :  { %1088 = vmatprep.subr.bf16.mxu1 %v1334_v1  ;;  %1160 = vmatprep.subr.bf16.mxu0 %v1334_v1 }
  0x60   :  { %1090 = vmatpush3.bf16.xpose.msk.msra.mxu1 %vm1555_vm2, %v1337_v9  ;;  %1162 = vmatpush3.bf16.xpose.msk.msra.mxu0 %vm1555_vm2, %v1337_v9 }
  0x61   :  { %1091 = vmatprep.subr.bf16.mxu1 %v1334_v1  ;;  %1163 = vmatprep.subr.bf16.mxu0 %v1334_v1 }
  0x68   :  { %1093 = vmatpush3.bf16.xpose.msk.msra.mxu1 %vm1589_vm7, %v1337_v9  ;;  %1165 = vmatpush3.bf16.xpose.msk.msra.mxu0 %vm1589_vm7, %v1337_v9 }
  0x69   :  { %1094 = vmatprep.subr.bf16.mxu1 %v1334_v1  ;;  %1166 = vmatprep.subr.bf16.mxu0 %v1334_v1 }
  0x70   :  { %1096 = vmatpush3.bf16.xpose.msk.msra.mxu1 %vm1624_vm13, %v1337_v9  ;;  %1168 = vmatpush3.bf16.xpose.msk.msra.mxu0 %vm1624_vm13, %v1337_v9 }
  0x71   :  { %1097 = vmatprep.subr.bf16.mxu1 %v1334_v1  ;;  %1169 = vmatprep.subr.bf16.mxu0 %v1334_v1 }
  0x78   :  { %1099 = vmatpush3.bf16.xpose.msk.msra.mxu1 %vm1654_vm14, %v1337_v9  ;;  %1171 = vmatpush3.bf16.xpose.msk.msra.mxu0 %vm1654_vm14, %v1337_v9 }
  0x79   :  { %1100 = vmatprep.subr.bf16.mxu1 %v1334_v1  ;;  %1172 = vmatprep.subr.bf16.mxu0 %v1334_v1 }
  0x7f   :  { %899 = vmatmul.mubr.f32.vlgmr.msra.gmra.mrb[0].mxu1 %v214_v5  ;;  %1004 = vmatmul.mubr.f32.vlgmr.msra.gmra.mrb[0].mxu0 %v212_v18  ;;  %v259_v18 = vsub.f32 %v1527_v37, %v258_v62  ;;  %v271_v5 = vsub.f32 %v1531_v39, %v270_v20 }
  0x80   :  { %1102 = vmatpush3.bf16.xpose.msra.mxu1 %v1101_v28  ;;  %1174 = vmatpush3.bf16.xpose.msra.mxu0 %v1173_v29  ;;  %v277_v28 = vsub.f32 %v1534_v40, %v276_v23  ;;  %v282_v29 = vand.u32 4294901760, %v1561_v49 }
  0x81   :  { %1103 = vmatprep.subr.bf16.mxu1 %v1334_v1  ;;  %1175 = vmatprep.subr.bf16.mxu0 %v1334_v1  ;;  %v260_v24 = vand.u32 4294901760, %v259_v18  ;;  %v272_v43 = vand.u32 4294901760, %v271_v5  ;;  %v312_v18 = vand.u32 4294901760, %v1630_v12 }
  0x82   :  { %933 = vmatprep.mubr.msk.f32.mxu1 %vm1335_vm0, %v1336_v3  ;;  %1038 = vmatprep.mubr.msk.f32.mxu0 %vm1335_vm0, %v1336_v3  ;;  %v278_v44 = vand.u32 4294901760, %v277_v28  ;;  %v283_v54 = vsub.f32 %v1561_v49, %v282_v29  ;;  %v1188_v4 = vpack.c.bf16 %v288_v33, %v282_v29 }
  0x83   :  { %v1110_v26 = vpack.c.bf16 %v266_v25, %v260_v24 }
  0x84   :  { %v1113_v51 = vpack.c.bf16 %v278_v44, %v272_v43  ;;  %v284_v61 = vand.u32 4294901760, %v283_v54 }
  0x88   :  { %1105 = vmatpush3.bf16.xpose.msra.mxu1 %v1104_v55  ;;  %1177 = vmatpush3.bf16.xpose.msra.mxu0 %v1176_v56  ;;  %v289_v55 = vsub.f32 %v1563_v50, %v288_v33  ;;  %v294_v56 = vand.u32 4294901760, %v1594_v59 }
  0x89   :  { %1106 = vmatprep.subr.bf16.mxu1 %v1334_v1  ;;  %1178 = vmatprep.subr.bf16.mxu0 %v1334_v1 }
  0x8a   :  { %v290_v62 = vand.u32 4294901760, %v289_v55  ;;  %v295_v6 = vsub.f32 %v1594_v59, %v294_v56  ;;  %v1191_v24 = vpack.c.bf16 %v300_v58, %v294_v56 }
  0x8c   :  { %v1116_v63 = vpack.c.bf16 %v290_v62, %v284_v61  ;;  %v296_v19 = vand.u32 4294901760, %v295_v6 }
  0x90   :  { %1108 = vmatpush3.bf16.xpose.msra.mxu1 %v1107_v15  ;;  %1180 = vmatpush3.bf16.xpose.msra.mxu0 %v1179_v16  ;;  %v301_v15 = vsub.f32 %v1596_v60, %v300_v58  ;;  %v306_v16 = vand.u32 4294901760, %v1628_v11 }
  0x91   :  { %1109 = vmatprep.subr.bf16.mxu1 %v1334_v1  ;;  %1181 = vmatprep.subr.bf16.mxu0 %v1334_v1 }
  0x92   :  { %v302_v20 = vand.u32 4294901760, %v301_v15  ;;  %v307_v25 = vsub.f32 %v1628_v11, %v306_v16  ;;  %v1194_v29 = vpack.c.bf16 %v312_v18, %v306_v16 }
  0x94   :  { %v1119_v23 = vpack.c.bf16 %v302_v20, %v296_v19 }
  0x98   :  { %1111 = vmatpush3.bf16.xpose.msra.mxu1 %v1110_v26  ;;  %1183 = vmatpush3.bf16.xpose.msra.mxu0 %v1182_v27  ;;  %v313_v26 = vsub.f32 %v1630_v12, %v312_v18  ;;  %v308_v27 = vand.u32 4294901760, %v307_v25 }
  0x99   :  { %1112 = vmatprep.subr.bf16.mxu1 %v1334_v1  ;;  %1184 = vmatprep.subr.bf16.mxu0 %v1334_v1 }
  0x9a   :  { %v314_v5 = vand.u32 4294901760, %v313_v26 }
  0x9c   :  { %v1122_v28 = vpack.c.bf16 %v314_v5, %v308_v27 }
  0xa0   :  { %1114 = vmatpush3.bf16.xpose.msra.mxu1 %v1113_v51  ;;  %1186 = vmatpush3.bf16.xpose.msra.mxu0 %v1185_v52 }
  0xa1   :  { %1115 = vmatprep.subr.bf16.mxu1 %v1334_v1  ;;  %1187 = vmatprep.subr.bf16.mxu0 %v1334_v1 }
  0xa8   :  { %1117 = vmatpush3.bf16.xpose.msra.mxu1 %v1116_v63  ;;  %1189 = vmatpush3.bf16.xpose.msra.mxu0 %v1188_v4 }
  0xa9   :  { %1118 = vmatprep.subr.bf16.mxu1 %v1334_v1  ;;  %1190 = vmatprep.subr.bf16.mxu0 %v1334_v1 }
  0xb0   :  { %1120 = vmatpush3.bf16.xpose.msra.mxu1 %v1119_v23  ;;  %1192 = vmatpush3.bf16.xpose.msra.mxu0 %v1191_v24 }
  0xb1   :  { %1121 = vmatprep.subr.bf16.mxu1 %v1334_v1  ;;  %1193 = vmatprep.subr.bf16.mxu0 %v1334_v1 }
  0xb8   :  { %1123 = vmatpush3.bf16.xpose.msra.mxu1 %v1122_v28  ;;  %1195 = vmatpush3.bf16.xpose.msra.mxu0 %v1194_v29 }
  0xb9   :  { %1124 = vmatprep.subr.bf16.mxu1 %v1334_v1  ;;  %1196 = vmatprep.subr.bf16.mxu0 %v1334_v1 }
  0xbf   :  { %934 = vmatmul.mubr.f32.vlgmr.msra.gmra.mrb[0].mxu1 %v1612_v2  ;;  %1039 = vmatmul.mubr.f32.vlgmr.msra.gmra.mrb[0].mxu0 %v1612_v2 }
  0xc0   :  { %1126 = vmatpush3.bf16.xpose.msra.mxu1 %v1125_v41  ;;  %1198 = vmatpush3.bf16.xpose.msk.msra.mxu0 %vm1416_vm3, %v1337_v9 }
  0xc1   :  { %1127 = vmatprep.subr.bf16.mxu1 %v1334_v1  ;;  %1199 = vmatprep.subr.bf16.mxu0 %v1334_v1 }
  0xc2   :  { %968 = vmatprep.mubr.msk.f32.mxu1 %vm1335_vm0, %v1336_v3  ;;  %1073 = vmatprep.mubr.msk.f32.mxu0 %vm1335_vm0, %v1336_v3 }
  0xc8   :  { %1129 = vmatpush3.bf16.xpose.msra.mxu1 %v1128_v42  ;;  %1201 = vmatpush3.bf16.xpose.msk.msra.mxu0 %vm1434_vm6, %v1337_v9 }
  0xc9   :  { %1130 = vmatprep.subr.bf16.mxu1 %v1334_v1  ;;  %1202 = vmatprep.subr.bf16.mxu0 %v1334_v1 }
  0xd0   :  { %1132 = vmatpush3.bf16.xpose.msra.mxu1 %v1131_v45  ;;  %1204 = vmatpush3.bf16.xpose.msk.msra.mxu0 %vm1454_vm9, %v1337_v9 }
  0xd1   :  { %1133 = vmatprep.subr.bf16.mxu1 %v1334_v1  ;;  %1205 = vmatprep.subr.bf16.mxu0 %v1334_v1 }
  0xd8   :  { %1135 = vmatpush3.bf16.xpose.msra.mxu1 %v1134_v46  ;;  %1207 = vmatpush3.bf16.xpose.msk.msra.mxu0 %vm1483_vm12, %v1337_v9 }
  0xd9   :  { %1136 = vmatprep.subr.bf16.mxu1 %v1334_v1  ;;  %1208 = vmatprep.subr.bf16.mxu0 %v1334_v1 }
  0xe0   :  { %1138 = vmatpush3.bf16.xpose.msra.mxu1 %v1137_v48  ;;  %1210 = vmatpush3.bf16.xpose.msk.msra.mxu0 %vm1555_vm2, %v1337_v9 }
  0xe1   :  { %1139 = vmatprep.subr.bf16.mxu1 %v1334_v1  ;;  %1211 = vmatprep.subr.bf16.mxu0 %v1334_v1 }
  0xe8   :  { %1141 = vmatpush3.bf16.xpose.msra.mxu1 %v1140_v53  ;;  %1213 = vmatpush3.bf16.xpose.msk.msra.mxu0 %vm1589_vm7, %v1337_v9 }
  0xe9   :  { %1142 = vmatprep.subr.bf16.mxu1 %v1334_v1  ;;  %1214 = vmatprep.subr.bf16.mxu0 %v1334_v1 }
  0xf0   :  { %1144 = vmatpush3.bf16.xpose.msra.mxu1 %v1143_v0  ;;  %1216 = vmatpush3.bf16.xpose.msk.msra.mxu0 %vm1624_vm13, %v1337_v9 }
  0xf1   :  { %1145 = vmatprep.subr.bf16.mxu1 %v1334_v1  ;;  %1217 = vmatprep.subr.bf16.mxu0 %v1334_v1 }
  0xf8   :  { %1147 = vmatpush3.bf16.xpose.msra.mxu1 %v1146_v17  ;;  %1219 = vmatpush3.bf16.xpose.msk.msra.mxu0 %vm1654_vm14, %v1337_v9 }
  0xff   :  { %969 = vmatmul.mubr.f32.vlgmr.msra.gmra.mrb[0].mxu1 %v1633_v14  ;;  %1074 = vmatmul.mubr.f32.vlgmr.msra.gmra.mrb[0].mxu0 %v1612_v2 }
 0x1d2   :  { %v439_v3 = vpop.f32.mrb[0].mxu1  ;;  %v686_v8 = vpop.f32.mrb[0].mxu0 }
 0x1d3   :  { %v1220_v10 = vadd.f32 %v686_v8, %v439_v3  ;;  %v970_v13 = vpop.f32.mrb[1].mxu1  ;;  %v1075_v22 = vpop.f32.mrb[1].mxu0 }
 0x1d5   :  { %696 = vst [vmem:[#allocation9] sm:$0xff] %v1220_v10 }
 0x1d6   :  { %1314 = shalt.err (!%p1311_p0)
}
 0x1d7   :  { %s1315_s26 = scalar_lea.hbm %s1800_s3, 128 }
 0x1d8   :  { %p1316_p1 = scmp.ne.s32.totalorder %s1800_s3, %s1315_s26  ;;  %p1319_p2 = scmp.lt.u32.totalorder %s1315_s26, %s1800_s3 }
 0x1da   :  { %p1321_p3 = pnand %p1319_p2, %p1316_p1 }
 0x1dc   :  { %1324 = shalt.err (!%p1321_p3)
}
 0x1dd   :  { %706 = dma.vmem_to_hbm [thread:$0]  %s704_s22, 128, %s1800_s3, [#allocation5]  }
 0x1de   :  { %1329 = dma.done.wait [#allocation5], 128  }
 0x1df   :  { %1330 = vsyncadd [#allocation5], 4294967168 }
 0x1e0   :  { %710 = vsyncpa [#allocation4], 1 }
 0x1e1   :  { %711 = vsyncpa [#allocation7], 1 }
 0x1e2   :  { %712 = vsyncpa [#allocation5], 1 }

</bundles_post_ra>
